<compile_context>
chip_gen: v5e
topology: v5e:2x2
jax: 0.10.0
libtpu: 0.0.40
codegen_flags: <defaults>
</compile_context>

<pallas_src>
import jax
import jax.numpy as jnp
from jax.experimental import pallas as pl
from jax.experimental.pallas import tpu as pltpu


def _spatial_fc_kernel(x_ref, w_ref, b_ref, o_ref):
    # x_ref: (Bt, S, Pt) compute dtype; w_ref: (S, S); b_ref: (S, 1) f32;
    # o_ref: (Bt, S, Pt).
    w = w_ref[...]          # hoisted: loaded once per grid step
    b = b_ref[...]
    bt = x_ref.shape[0]

    def body(i, carry):
        # (S, S) @ (S, Pt) on the MXU with f32 accumulation, f32 bias add.
        y = jnp.dot(w, x_ref[i], preferred_element_type=jnp.float32)
        o_ref[i] = (y + b).astype(o_ref.dtype)
        return carry

    if bt <= 16:
        jax.lax.fori_loop(0, bt, body, None, unroll=True)
    else:
        # TODO(synk): for very large Bt a single (S, Bt*P) matmul (batch folded
        # into lanes) would use the MXU better; needs an in-kernel transpose.
        jax.lax.fori_loop(0, bt, body, None)


def _vmem_limit_bytes():
    """Per-generation VMEM budget: ~3/4 of physical, capped at 96 MiB
    (v5e/v6e: 128 MiB -> 96 MiB; v7x: 64 MiB -> 48 MiB)."""
    try:
        cap = int(pltpu.get_tpu_info().vmem_capacity_bytes)
    except Exception:
        cap = 64 << 20  # conservative default (v7x per-TensorCore VMEM)
    return int(min(cap * 3 // 4, 96 << 20))


def _pick_batch_tile(batch, n_p_tiles, per_batch_elems, itemsize, max_tile_elems):
    """Choose Bt | batch: grow the tile until it amortizes the per-step
    overhead (~2 MiB of x), keep >= 8 grid steps when tiles stay >= ~1 MiB,
    and never collapse a multi-batch problem to a single grid step (v7x has
    two TensorCores sharing the 'parallel' grid axes)."""
    divisors = [d for d in range(1, batch + 1) if batch % d == 0]
    fitting = [d for d in divisors if d * per_batch_elems <= max_tile_elems]
    if not fitting:
        return 1
    amortize_elems = (2 << 20) // itemsize   # ~2 MiB of x per step
    floor_elems = (1 << 20) // itemsize      # don't go thinner just for steps
    bt = next((d for d in fitting if d * per_batch_elems >= amortize_elems),
              fitting[-1])
    if (batch // bt) * n_p_tiles < 8:
        for d in reversed([d for d in fitting if d < bt]):
            if (batch // d) * n_p_tiles >= 8 and d * per_batch_elems >= floor_elems:
                bt = d
                break
    if (batch // bt) * n_p_tiles == 1 and len(fitting) > 1:
        bt = fitting[-2]
    return bt


def spatial_fc(x, weight, bias):
    """SpatialFC forward: out[b, s, p] = sum_t weight[s, t] * x[b, t, p] + bias[s].

    x: (B, S, P); weight: (S, S) (PyTorch nn.Linear layout); bias: (S,).
    Runs in x.dtype on the MXU with f32 accumulation and an f32 bias add;
    pass bf16 activations for the memory-bound fast path (output dtype ==
    x.dtype).  f32 input reproduces the PyTorch module exactly.
    """
    B, S, P = x.shape
    assert weight.shape == (S, S)
    assert bias.shape == (S,)

    cdt = x.dtype
    x_item = jnp.dtype(cdt).itemsize
    out_item = x_item

    wp = weight.astype(cdt)                       # tiny one-off cast
    bp = bias.astype(jnp.float32).reshape(S, 1)   # f32 bias, broadcast over lanes

    vmem_limit = _vmem_limit_bytes()
    resident = 2 * (S * S * x_item + S * 4)       # weight + bias buffers
    budget = max(vmem_limit - resident - (4 << 20), 1 << 20)
    max_tile_elems = budget // (2 * (x_item + out_item))  # dbl-buffered in + out

    # Spatial (lane) axis: keep the full extent whenever it fits -> contiguous
    # HBM slabs per step, no padding and no extra HBM pass.
    if S * P <= max_tile_elems:
        p_tile, n_pt, p_pad = P, 1, P
    else:
        # Rare fallback (huge S*P): tile the lane axis in 128-lane multiples.
        p_tile = max(128, (max_tile_elems // S) // 128 * 128)
        n_pt = -(-P // p_tile)
        p_pad = n_pt * p_tile

    b_tile = _pick_batch_tile(B, n_pt, S * p_tile, x_item, max_tile_elems)

    xp = x
    if p_pad != P:
        # TODO(synk): this pad (and the slice below) adds an extra HBM pass;
        # only hit when S*P alone exceeds the per-step VMEM tile budget.
        xp = jnp.pad(x, ((0, 0), (0, 0), (0, p_pad - P)))

    grid = (B // b_tile, n_pt)
    out = pl.pallas_call(
        _spatial_fc_kernel,
        out_shape=jax.ShapeDtypeStruct((B, S, p_pad), cdt),
        grid_spec=pltpu.PrefetchScalarGridSpec(
            num_scalar_prefetch=0,
            grid=grid,
            in_specs=[
                # Contiguous batch-folded slab of x.
                pl.BlockSpec((b_tile, S, p_tile), lambda b, j: (b, 0, j)),
                # Weight / bias: constant index maps -> VMEM-resident.
                pl.BlockSpec((S, S), lambda b, j: (0, 0)),
                pl.BlockSpec((S, 1), lambda b, j: (0, 0)),
            ],
            out_specs=pl.BlockSpec((b_tile, S, p_tile), lambda b, j: (b, 0, j)),
        ),
        compiler_params=pltpu.CompilerParams(
            dimension_semantics=("parallel", "parallel"),
            vmem_limit_bytes=vmem_limit,
        ),
        cost_estimate=pl.CostEstimate(
            flops=2 * B * S * S * p_pad,
            transcendentals=0,
            bytes_accessed=B * S * p_pad * (x_item + out_item)
                           + S * S * x_item + S * 4,
        ),
    )(xp, wp, bp)

    if p_pad != P:
        out = out[..., :P]
    return out


def spatial_fc_ref(x, weight, bias):
    # Pure-JAX reference matching torch: transpose -> linear -> transpose.
    xt = jnp.swapaxes(x, 1, 2)                      # (B, P, S)
    y = jnp.einsum("bps,os->bpo", xt, weight) + bias
    return jnp.swapaxes(y, 1, 2)                    # (B, S, P)


if __name__ == "__main__":
    key = jax.random.PRNGKey(0)

    def make_case(B, S, P, k):
        kx, kw, kb = jax.random.split(k, 3)
        x = jax.random.normal(kx, (B, S, P), dtype=jnp.float32)
        # nn.Linear(dim, dim) init: U(-1/sqrt(dim), 1/sqrt(dim)).
        bound = 1.0 / jnp.sqrt(jnp.float32(S))
        weight = jax.random.uniform(kw, (S, S), jnp.float32, -bound, bound)
        bias = jax.random.uniform(kb, (S,), jnp.float32, -bound, bound)
        return x, weight, bias

    k1, k2 = jax.random.split(key)

    # f32 path: exact module numerics (batch=2, seq=8, spatial=16).
    x, w, b = make_case(2, 8, 16, k1)
    out = jax.block_until_ready(spatial_fc(x, w, b))
    ref = spatial_fc_ref(x, w, b)
    assert out.shape == x.shape and out.dtype == x.dtype
    assert jnp.allclose(out, ref, atol=1e-5, rtol=1e-5), "f32 mismatch vs reference"

    # bf16 fast path on an uneven siMLPe-like shape (no padding needed: blocks
    # use the full S and P extents).
    x2, w2, b2 = make_case(2, 20, 66, k2)
    x2b = x2.astype(jnp.bfloat16)
    out2 = jax.block_until_ready(spatial_fc(x2b, w2, b2))
    ref2 = spatial_fc_ref(x2b.astype(jnp.float32),
                          w2.astype(jnp.bfloat16).astype(jnp.float32), b2)
    assert out2.shape == x2.shape and out2.dtype == jnp.bfloat16
    assert jnp.allclose(out2.astype(jnp.float32), ref2, atol=5e-2, rtol=5e-2), \
        "bf16 mismatch vs reference"

    print("KERNEL_OK")
</pallas_src>

<mosaic_0001>
module attributes {stable_mosaic.version = 11 : i64} {
  func.func @_spatial_fc_kernel(%arg0: i32, %arg1: i32, %arg2: memref<1x8x16xf32, #tpu.memory_space<vmem>>, %arg3: memref<8x8xf32, #tpu.memory_space<vmem>>, %arg4: memref<8x1xf32, #tpu.memory_space<vmem>>, %arg5: memref<1x8x16xf32, #tpu.memory_space<vmem>>) attributes {dimension_semantics = [#tpu.dimension_semantics<parallel>, #tpu.dimension_semantics<parallel>], iteration_bounds = array<i64: 2, 1>, scalar_prefetch = 0 : i64, scratch_operands = 0 : i64, tpu.core_type = #tpu.core_type<tc>, window_params = [{transform_indices = @transform_0, window_bounds = array<i64: 1, 8, 16>}, {pipeline_mode = #tpu.pipeline_mode<synchronous>, transform_indices = @transform_1, window_bounds = array<i64: 8, 8>}, {pipeline_mode = #tpu.pipeline_mode<synchronous>, transform_indices = @transform_2, window_bounds = array<i64: 8, 1>}, {transform_indices = @transform_3, window_bounds = array<i64: 1, 8, 16>}]} {
    %c0 = arith.constant 0 : index
    %c0_0 = arith.constant 0 : index
    %0 = vector.load %arg3[%c0, %c0_0] : memref<8x8xf32, #tpu.memory_space<vmem>>, vector<8x8xf32>
    %c0_1 = arith.constant 0 : index
    %c0_2 = arith.constant 0 : index
    %1 = vector.load %arg4[%c0_1, %c0_2] : memref<8x1xf32, #tpu.memory_space<vmem>>, vector<8x1xf32>
    %c0_i32 = arith.constant 0 : i32
    %2 = arith.index_cast %c0_i32 : i32 to index
    %c0_3 = arith.constant 0 : index
    %c0_4 = arith.constant 0 : index
    %3 = vector.load %arg2[%2, %c0_3, %c0_4] : memref<1x8x16xf32, #tpu.memory_space<vmem>>, vector<1x8x16xf32>
    %4 = vector.shape_cast %3 : vector<1x8x16xf32> to vector<8x16xf32>
    %cst = arith.constant dense<0.000000e+00> : vector<8x16xf32>
    %5 = tpu.matmul %0, %4, %cst {dimension_numbers = #tpu.dot_dimension_numbers<[1], [0], [0], [1], [0, 0, 1, 1], [], []>} : vector<8x8xf32>, vector<8x16xf32>, vector<8x16xf32> -> vector<8x16xf32>
    %6 = vector.broadcast %1 : vector<8x1xf32> to vector<8x16xf32>
    %7 = arith.addf %5, %6 : vector<8x16xf32>
    %8 = arith.index_cast %c0_i32 : i32 to index
    %c0_5 = arith.constant 0 : index
    %c0_6 = arith.constant 0 : index
    %9 = vector.load %arg5[%8, %c0_5, %c0_6] : memref<1x8x16xf32, #tpu.memory_space<vmem>>, vector<1x8x16xf32>
    %10 = vector.shape_cast %9 : vector<1x8x16xf32> to vector<8x16xf32>
    %11 = vector.shape_cast %7 : vector<8x16xf32> to vector<1x8x16xf32>
    tpu.vector_store %arg5[%8, %c0_5, %c0_6], %11 {strides = array<i32>} : memref<1x8x16xf32, #tpu.memory_space<vmem>>, vector<1x8x16xf32>,
    %c1_i32 = arith.constant 1 : i32
    return
  }
  func.func @transform_0(%arg0: i32, %arg1: i32) -> (i32, i32, i32) {
    %c0_i32 = arith.constant 0 : i32
    %c0_i32_0 = arith.constant 0 : i32
    return %arg0, %c0_i32, %arg1 : i32, i32, i32
  }
  func.func @transform_1(%arg0: i32, %arg1: i32) -> (i32, i32) {
    %c0_i32 = arith.constant 0 : i32
    %c0_i32_0 = arith.constant 0 : i32
    %c0_i32_1 = arith.constant 0 : i32
    return %c0_i32, %c0_i32_0 : i32, i32
  }
  func.func @transform_2(%arg0: i32, %arg1: i32) -> (i32, i32) {
    %c0_i32 = arith.constant 0 : i32
    %c0_i32_0 = arith.constant 0 : i32
    %c0_i32_1 = arith.constant 0 : i32
    return %c0_i32, %c0_i32_0 : i32, i32
  }
  func.func @transform_3(%arg0: i32, %arg1: i32) -> (i32, i32, i32) {
    %c0_i32 = arith.constant 0 : i32
    %c0_i32_0 = arith.constant 0 : i32
    return %arg0, %c0_i32, %arg1 : i32, i32, i32
  }
}

</mosaic_0001>

<bundles_post_ra>
// kernel: tpu_custom_call.1
= control target key start
LH: loop header
LB: loop body
LE: loop exit
PB: predicated region body
PF: predicated region fallthrough
CT: control target
= control target key end

     0   :  { %8 = vsyncpa [#allocation3], 0  ;;  %s675_s0 = inlined_call_operand.hbm [shape: f32[2,8,16], index: 0, kind: input, shape index: {}]   ;;  %s676_s1 = inlined_call_operand.vmem [shape: f32[8,8], index: 1, kind: input, shape index: {}]   ;;  %s677_s2 = inlined_call_operand.vmem [shape: f32[8,1], index: 2, kind: input, shape index: {}]   ;;  %s678_s3 = inlined_call_operand.hbm [shape: f32[2,8,16], index: 3, kind: output, shape index: {}]  }
   0x1   :  { %10 = vsyncpa [#allocation3 + $0x1], 0 }
   0x2   :  { %11 = vsyncpa [#allocation4], 0 }
   0x3   :  { %13 = vsyncpa [#allocation4 + $0x1], 0  ;;  %s549_s12 = smov 0   ;;  %s551_s13 = smov 0  }
   0x4   :  { %s553_s14 = smov 0   ;;  %s555_s15 = smov 0  }
   0x5   :  { %s557_s16 = smov 0   ;;  %s559_s17 = smov 0  }
   0x6 LB: > { %s336_s18 = sadd.s32 4294967295, %s526_s17   ;;  %s337_s19 = sadd.s32 4294967294, %s526_s17   ;;  %s526_s17 = sphi %s559_s17, %s19_s17   ;;  %s522_s16 = sphi %s557_s16, %s687_s16   ;;  %s518_s15 = sphi %s555_s15, %s686_s15   ;;  %s514_s14 = sphi %s553_s14, %s685_s14   ;;  %s510_s13 = sphi %s551_s13, %s684_s13   ;;  %s506_s12 = sphi %s549_s12, %s683_s12  }
   0x7   : > { %s31_s20 = sadd.s32 1, %s522_s16  ;;  %s40_s21 = sadd.s32 1, %s514_s14 }
   0x8   : > { %p33_p0 = scmp.ge.s32.totalorder %s31_s20, 2  ;;  %p47_p1 = scmp.ne.s32.totalorder %s514_s14, %s510_s13 }
   0x9   : > { %p48_p2 = scmp.eq.s32.totalorder %s526_s17, 0  ;;  %p53_p3 = scmp.ne.s32.totalorder %s510_s13, %s506_s12 }
   0xa   : > { %s689_s20 = smov (%p33_p0, %s31_s20), 0  ;;  %p54_p5 = scmp.eq.s32.totalorder %s336_s18, 0 }
   0xb   : > { %p590_p4 = por %p48_p2, %p47_p1  ;;  %s35_s23 = ssub.s32 %s522_s16, %s689_s20 }
   0xc   : > { %p121_p6 = scmp.eq.s32.totalorder %s336_s18, 1  ;;  %p38_p7 = scmp.eq.s32.totalorder %s35_s23, 0 }
   0xd   : > { %p596_p8 = por %p54_p5, %p53_p3  ;;  %p127_p10 = scmp.eq.s32.totalorder %s337_s19, 1 }
   0xe   : > { %p600_p9 = por %p121_p6, %p47_p1  ;;  %p339_p12 = scmp.ge.s32.totalorder %s526_s17, 2 }
   0xf   : > { %s605_s26 = scalar_select %p38_p7, %s514_s14, %s40_s21  }
  0x10   : > { %p607_p11 = por %p127_p10, %p53_p3  ;;  %p362_p13 = scmp.lt.s32.totalorder %s526_s17, 2 }
  0x11   : > { %s153_s28 = sand.u32 1, %s514_s14   ;;  %s341_s30 = sshll.u32 %s522_s16, 3 }
  0x12   : > { %s340_s29 = sshll.u32 %s153_s28, 3  ;;  %s162_s6 = scalar_lea.hbm %s675_s0, %s341_s30 }
  0x13   : > { %s157_s7 = scalar_lea.vmem [#allocation2], %s340_s29  ;;  %s164_s9 = sshll.u32 %s162_s6, 4  ;;  %s165_s9 = int_to_ptr.hbm [resolvable:$true] %s164_s9 }
  0x14   : > { %s166_s8 = sshll.u32 %s157_s7, 4  ;;  %p355_p0 = pnand %p362_p13, %p590_p4  ;;  %s167_s8 = int_to_ptr.vmem [resolvable:$true] %s166_s8 }
  0x15   : > { %p342_p1 = scmp.ge.s32.totalorder %s526_s17, 1  ;;  %p171_p2 = scmp.lt.s32.totalorder %s526_s17, 3 }
  0x16   : > { %s154_s10 = scalar_lea.sflag [#allocation3], %s153_s28 }
  0x17   : > { %357 = dma.hbm_to_vmem [thread:$0]  (!%p355_p0), %s165_s9, 128, %s167_s8, %s154_s10  }
  0x18   : > { %p172_p3 = pnand %p342_p1, %p171_p2 }
  0x19   : > { %s623_s11 = sand.u32 (!%p172_p3), 1, %s510_s13  }
  0x1a   : > { %175 = sbr.rel (%p172_p3) target bundleno = 165 (0xa5), region = 32  ;;  %s343_s18 = sshll.u32 (!%p172_p3), %s623_s11, 3 }
  0x1b   : > { %s178_s19 = scalar_lea.sflag (!%p172_p3), [#allocation3], %s623_s11  ;;  %s181_s21 = scalar_lea.vmem (!%p172_p3), [#allocation2], %s343_s18 }
  0x1f   : > { %497 = dma.done.wait (%p596_p8), %s178_s19, 128  }
  0x20   : > { %499 = vsyncadd (%p596_p8), %s178_s19, 4294967168  ;;  %v528_v0 = vmov 0   ;;  %vm213_vm0 = vcmask 64512   ;;  %v207_v1 = vld [vmem:[%s181_s21] sm:$0xff]  ;;  %s347_s30 = sshll.u32 %s518_s15, 3  ;;  %s204_s6 = scalar_lea.vmem [#allocation5], %s343_s18 }
  0x21   : > { %413 = vset.pattern.permute.xlu0 %v528_v0  ;;  %v205_v2 = vld [vmem:[%s676_s1] sm:$0xff]  ;;  %232 = vmatpush.msra.mxu0 %v207_v1  ;;  %s251_s5 = scalar_lea.hbm %s678_s3, %s347_s30  ;;  %s253_s7 = sshll.u32 %s204_s6, 4  ;;  %vm237_vm1 = vcmask 130048   ;;  %s254_s7 = int_to_ptr.vmem [resolvable:$true] %s253_s7 }
  0x22   : > { %v206_v3 = vld [vmem:[%s677_s2] sm:$0xff]  ;;  %345 = vmatmul.msk.f32.vlgmr.msra.gmra.mxu0 %vm213_vm0, %v205_v2  ;;  %s255_s8 = sshll.u32 %s251_s5, 4  ;;  %s240_s9 = scalar_lea.sflag [#allocation4], %s623_s11  ;;  %s256_s8 = int_to_ptr.hbm [resolvable:$true] %s255_s8 }
  0x23   : > { %210 = vperm.xlu0 %413, %v206_v3   ;;  %s458_s10 = sshra.s32 %s256_s8, 4  ;;  %s464_s18 = scalar_lea.hbm %s678_s3, 16  ;;  %s459_s10 = int_to_ptr.hbm [resolvable:$true] %s458_s10 }
  0x24   : > { %s460_s19 = scalar_lea.hbm %s459_s10, 8  ;;  %p465_p7 = scmp.lt.s32.totalorder %s459_s10, %s678_s3 }
  0x25   : > { %p461_p4 = scmp.ne.s32.totalorder %s459_s10, %s460_s19  ;;  %p466_p8 = scmp.lt.s32.totalorder %s464_s18, %s460_s19 }
  0x27   : > { %p462_p5 = pnand %p461_p4, %p600_p9  ;;  %p467_p10 = por %p466_p8, %p465_p7 }
  0x29   : > { %p463_p6 = pneg %p462_p5 }
  0x2b   : > { %p468_p13 = pnand %p467_p10, %p463_p6 }
  0x95   : > { %v211_v4 = vpop.permute.xlu0 %210 }
  0x9f   : > { %v234_v5 = vpop.f32.mrf.mxu0 }
  0xa0   : > { %v235_v6 = vadd.f32 %v234_v5, %v211_v4 }
  0xa2   : > { %238 = vst.msk [vmem:[%s204_s6] sm:$0xff] %vm237_vm1, %v235_v6 }
  0xa3   : > { %471 = shalt.err (!%p468_p13)
}
  0xa4   : > { %352 = dma.vmem_to_hbm [thread:$0]  (%p600_p9), %s254_s7, 128, %s256_s8, %s240_s9  }
  0xa5 PF: > { %s267_s11 = sand.u32 1, %s506_s12   ;;  %p359_p0 = pnand %p339_p12, %p607_p11 }
  0xa6   : > { %s268_s28 = scalar_lea.sflag [#allocation4], %s267_s11 }
  0xa7   : > { %p360_p1 = pneg %p359_p0 }
  0xa9   : > { %501 = dma.done.wait (%p360_p1), %s268_s28, 128  }
  0xaa   : > { %503 = vsyncadd (%p360_p1), %s268_s28, 4294967168  ;;  %s19_s17 = sadd.s32 1, %s526_s17   ;;  %s683_s12 = smov %s510_s13 }
  0xab   : > { %p16_p2 = scmp.ge.s32.totalorder %s19_s17, 4   ;;  %s684_s13 = smov %s514_s14 }
  0xac   : > { %s685_s14 = smov %s605_s26  ;;  %s686_s15 = smov %s522_s16 }
  0xad   : > { %s687_s16 = smov %s689_s20  ;;  %18 = sbr.rel (!%p16_p2) target bundleno = 6 (0x6), region = 77 }
  0xb2   :  { %274 = vsyncpa [#allocation3], 1 }
  0xb3   :  { %276 = vsyncpa [#allocation3 + $0x1], 1 }
  0xb4   :  { %277 = vsyncpa [#allocation4], 1 }
  0xb5   :  { %279 = vsyncpa [#allocation4 + $0x1], 1 }

</bundles_post_ra>
